<compile_context>
chip_gen: v7x
topology: tpu7x:2x2x1
jax: 0.10.0
libtpu: 0.0.40
codegen_flags: <defaults>
</compile_context>

<pallas_src>
import functools

import numpy as np
import jax
import jax.numpy as jnp
from jax import lax
from jax.experimental import pallas as pl
from jax.experimental.pallas import tpu as pltpu

_BN_EPS = 1e-5


# --------------------------------------------------------------------------- #
# Kernel
# --------------------------------------------------------------------------- #
def _apply_act(y, act, slope):
    if act == "lrelu":
        return jnp.where(y >= 0.0, y, slope * y)
    if act == "relu":
        return jnp.maximum(y, 0.0)
    if act == "tanh":
        return jnp.tanh(y)
    return y


def _shifted_patches(x, masks, W, P):
    """Build the (9*C, P) im2col matrix from a lane-dense (C, P) tile.

    The 9 taps are produced by rotating the lane axis by -(dy*W + dx) (XLU)
    and multiplying by a precomputed boundary mask ('same' zero padding).
    Row order is (ky, kx, cin), matching the flattened weight layout.
    """
    rows = []
    k = 0
    for dy in (-1, 0, 1):
        for dx in (-1, 0, 1):
            off = dy * W + dx
            shifted = x if off == 0 else pltpu.roll(x, shift=(-off) % P, axis=1)
            if dy == 0 and dx == 0:
                rows.append(shifted)                       # center tap: no mask
            else:
                rows.append(shifted * masks[k:k + 1, :])
            k += 1
    return jnp.concatenate(rows, axis=0)                   # (9*C, P)


def _mixed_fusion_kernel(x1_ref, x2_ref, mask_ref, w1_ref, s1_ref,
                         w2_ref, s2_ref, o_ref, *, W, P, act, slope):
    x1 = x1_ref[0]                                          # (Cin, P) f32
    x2 = x2_ref[0]
    masks = mask_ref[...]                                   # (9, P) f32

    # fusion: cat([sum, mul, max]) along the channel (sublane) axis -> (3C, P)
    f = jnp.concatenate([x1 + x2, x1 * x2, jnp.maximum(x1, x2)], axis=0)

    # layer 1: 3x3 conv ('same') + folded BN + act, all in VMEM
    p1 = _shifted_patches(f, masks, W, P)                   # (9*3C, P)
    y1 = jnp.dot(w1_ref[...], p1,
                 preferred_element_type=jnp.float32) + s1_ref[...]
    h = _apply_act(y1, act, slope)                          # (Cin, P)

    # layer 2: 3x3 conv ('same') + folded BN + act
    p2 = _shifted_patches(h, masks, W, P)                   # (9*Cin, P)
    y2 = jnp.dot(w2_ref[...], p2,
                 preferred_element_type=jnp.float32) + s2_ref[...]
    o_ref[0] = _apply_act(y2, act, slope).astype(o_ref.dtype)   # (Cout, P)


# --------------------------------------------------------------------------- #
# Host-side preparation
# --------------------------------------------------------------------------- #
def _fold_bn_into_conv(w, b, gamma, beta, mean, var, eps=_BN_EPS):
    """Fold eval-mode BatchNorm into the conv; return W^T (O, 9*I) + shift (O, 1)."""
    scale = gamma / jnp.sqrt(var + eps)                           # (O,)
    out_dim, cin = w.shape[0], w.shape[1]
    wt = (w * scale[:, None, None, None]).transpose(0, 2, 3, 1)   # (O, ky, kx, I)
    wt = wt.reshape(out_dim, 9 * cin).astype(jnp.float32)
    shift = ((b - mean) * scale + beta).reshape(out_dim, 1).astype(jnp.float32)
    return wt, shift


def prepare_kernel_params(raw):
    w1t, s1 = _fold_bn_into_conv(raw["w1"], raw["b1"], raw["g1"], raw["beta1"],
                                 raw["m1"], raw["v1"])
    w2t, s2 = _fold_bn_into_conv(raw["w2"], raw["b2"], raw["g2"], raw["beta2"],
                                 raw["m2"], raw["v2"])
    return {"w1t": w1t, "s1": s1, "w2t": w2t, "s2": s2}


def _make_boundary_masks(H, W):
    """(9, H*W) f32 validity masks for the 9 conv taps ('same' zero padding)."""
    P = H * W
    r = np.arange(P) // W
    c = np.arange(P) % W
    masks = np.zeros((9, P), np.float32)
    k = 0
    for dy in (-1, 0, 1):
        for dx in (-1, 0, 1):
            valid = (r + dy >= 0) & (r + dy < H) & (c + dx >= 0) & (c + dx < W)
            masks[k] = valid.astype(np.float32)
            k += 1
    return jnp.asarray(masks)


def mixed_fusion_block0(x1, x2, kparams, act="lrelu", slope=0.2):
    """Forward pass of MixedFusion_Block0.  x1, x2: (B, Cin, H, W) f32 (NCHW)."""
    B, C, H, W = x1.shape
    P = H * W
    x1f = x1.reshape(B, C, P)          # NCHW -> (B, C, H*W): pure reshape, free
    x2f = x2.reshape(B, C, P)
    masks = _make_boundary_masks(H, W)
    w1t, s1 = kparams["w1t"], kparams["s1"]
    w2t, s2 = kparams["w2t"], kparams["s2"]
    c_out = w2t.shape[0]

    out = pl.pallas_call(
        functools.partial(_mixed_fusion_kernel, W=W, P=P, act=act, slope=slope),
        out_shape=jax.ShapeDtypeStruct((B, c_out, P), jnp.float32),
        grid=(B,),
        in_specs=[
            pl.BlockSpec((1, C, P), lambda b: (b, 0, 0)),
            pl.BlockSpec((1, C, P), lambda b: (b, 0, 0)),
            pl.BlockSpec(masks.shape, lambda b: (0, 0)),
            pl.BlockSpec(w1t.shape, lambda b: (0, 0)),
            pl.BlockSpec(s1.shape, lambda b: (0, 0)),
            pl.BlockSpec(w2t.shape, lambda b: (0, 0)),
            pl.BlockSpec(s2.shape, lambda b: (0, 0)),
        ],
        out_specs=pl.BlockSpec((1, c_out, P), lambda b: (b, 0, 0)),
        compiler_params=pltpu.CompilerParams(
            dimension_semantics=("parallel",),
            vmem_limit_bytes=32 * 1024 * 1024,
        ),
    )(x1f, x2f, masks, w1t, s1, w2t, s2)

    return out.reshape(B, c_out, H, W)                       # free reshape


# --------------------------------------------------------------------------- #
# Deterministic parameter init + plain-JAX reference (correctness check)
# --------------------------------------------------------------------------- #
def init_raw_params(key, in_dim, out_dim):
    ks = jax.random.split(key, 8)
    w1 = jax.random.normal(ks[0], (in_dim, in_dim * 3, 3, 3),
                           jnp.float32) / np.sqrt(in_dim * 3 * 9)
    b1 = 0.05 * jax.random.normal(ks[1], (in_dim,), jnp.float32)
    w2 = jax.random.normal(ks[2], (out_dim, in_dim, 3, 3),
                           jnp.float32) / np.sqrt(in_dim * 9)
    b2 = 0.05 * jax.random.normal(ks[3], (out_dim,), jnp.float32)
    g1 = 1.0 + 0.1 * jax.random.normal(ks[4], (in_dim,), jnp.float32)
    beta1 = 0.1 * jax.random.normal(ks[5], (in_dim,), jnp.float32)
    g2 = 1.0 + 0.1 * jax.random.normal(ks[6], (out_dim,), jnp.float32)
    beta2 = 0.1 * jax.random.normal(ks[7], (out_dim,), jnp.float32)
    # eval-mode running statistics
    m1 = jnp.zeros((in_dim,), jnp.float32)
    v1 = jnp.ones((in_dim,), jnp.float32)
    m2 = jnp.zeros((out_dim,), jnp.float32)
    v2 = jnp.ones((out_dim,), jnp.float32)
    return dict(w1=w1, b1=b1, g1=g1, beta1=beta1, m1=m1, v1=v1,
                w2=w2, b2=b2, g2=g2, beta2=beta2, m2=m2, v2=v2)


def reference_forward(x1, x2, raw, act="lrelu", slope=0.2, eps=_BN_EPS):
    f = jnp.concatenate([x1 + x2, x1 * x2, jnp.maximum(x1, x2)], axis=1)

    def conv_bn_act(x, w, b, g, beta, mean, var):
        y = lax.conv_general_dilated(x, w, (1, 1), ((1, 1), (1, 1)),
                                     dimension_numbers=("NCHW", "OIHW", "NCHW"))
        y = y + b[None, :, None, None]
        scale = (g / jnp.sqrt(var + eps))[None, :, None, None]
        y = (y - mean[None, :, None, None]) * scale + beta[None, :, None, None]
        return _apply_act(y, act, slope)

    h = conv_bn_act(f, raw["w1"], raw["b1"], raw["g1"], raw["beta1"],
                    raw["m1"], raw["v1"])
    return conv_bn_act(h, raw["w2"], raw["b2"], raw["g2"], raw["beta2"],
                       raw["m2"], raw["v2"])


# --------------------------------------------------------------------------- #
if __name__ == "__main__":
    key = jax.random.PRNGKey(0)
    kx1, kx2, kw = jax.random.split(key, 3)

    B, C_in, C_out, H, W = 2, 4, 8, 16, 16
    x1 = jax.random.normal(kx1, (B, C_in, H, W), jnp.float32)
    x2 = jax.random.normal(kx2, (B, C_in, H, W), jnp.float32)

    raw = init_raw_params(kw, C_in, C_out)
    kparams = prepare_kernel_params(raw)

    # TODO(synk): act_fn is a constructor argument of the PyTorch module; RAFSNet
    # passes nn.LeakyReLU(0.2), which is what is used here (eval-mode BN only).
    fwd = jax.jit(lambda a, b: mixed_fusion_block0(a, b, kparams,
                                                   act="lrelu", slope=0.2))
    out = fwd(x1, x2)
    jax.block_until_ready(out)
    assert out.shape == (B, C_out, H, W)

    ref = reference_forward(x1, x2, raw, act="lrelu", slope=0.2)
    max_err = float(jnp.max(jnp.abs(out - ref)))
    mean_err = float(jnp.mean(jnp.abs(out - ref)))
    assert max_err < 2e-1 and mean_err < 2e-2, (max_err, mean_err)

    print("KERNEL_OK")
</pallas_src>

<mosaic_0001>
module attributes {stable_mosaic.version = 11 : i64} {
  func.func @_mixed_fusion_kernel(%arg0: i32, %arg1: memref<1x4x256xf32, #tpu.memory_space<vmem>>, %arg2: memref<1x4x256xf32, #tpu.memory_space<vmem>>, %arg3: memref<9x256xf32, #tpu.memory_space<vmem>>, %arg4: memref<4x108xf32, #tpu.memory_space<vmem>>, %arg5: memref<4x1xf32, #tpu.memory_space<vmem>>, %arg6: memref<8x36xf32, #tpu.memory_space<vmem>>, %arg7: memref<8x1xf32, #tpu.memory_space<vmem>>, %arg8: memref<1x8x256xf32, #tpu.memory_space<vmem>>) attributes {dimension_semantics = [#tpu.dimension_semantics<parallel>], iteration_bounds = array<i64: 2>, scalar_prefetch = 0 : i64, scratch_operands = 0 : i64, tpu.core_type = #tpu.core_type<tc>, window_params = [{transform_indices = @transform_0, window_bounds = array<i64: 1, 4, 256>}, {transform_indices = @transform_1, window_bounds = array<i64: 1, 4, 256>}, {pipeline_mode = #tpu.pipeline_mode<synchronous>, transform_indices = @transform_2, window_bounds = array<i64: 9, 256>}, {pipeline_mode = #tpu.pipeline_mode<synchronous>, transform_indices = @transform_3, window_bounds = array<i64: 4, 108>}, {pipeline_mode = #tpu.pipeline_mode<synchronous>, transform_indices = @transform_4, window_bounds = array<i64: 4, 1>}, {pipeline_mode = #tpu.pipeline_mode<synchronous>, transform_indices = @transform_5, window_bounds = array<i64: 8, 36>}, {pipeline_mode = #tpu.pipeline_mode<synchronous>, transform_indices = @transform_6, window_bounds = array<i64: 8, 1>}, {transform_indices = @transform_7, window_bounds = array<i64: 1, 8, 256>}]} {
    %c0 = arith.constant 0 : index
    %c0_0 = arith.constant 0 : index
    %c0_1 = arith.constant 0 : index
    %0 = vector.load %arg1[%c0, %c0_0, %c0_1] : memref<1x4x256xf32, #tpu.memory_space<vmem>>, vector<1x4x256xf32>
    %1 = vector.shape_cast %0 : vector<1x4x256xf32> to vector<4x256xf32>
    %c0_2 = arith.constant 0 : index
    %c0_3 = arith.constant 0 : index
    %c0_4 = arith.constant 0 : index
    %2 = vector.load %arg2[%c0_2, %c0_3, %c0_4] : memref<1x4x256xf32, #tpu.memory_space<vmem>>, vector<1x4x256xf32>
    %3 = vector.shape_cast %2 : vector<1x4x256xf32> to vector<4x256xf32>
    %c0_5 = arith.constant 0 : index
    %c0_6 = arith.constant 0 : index
    %4 = vector.load %arg3[%c0_5, %c0_6] : memref<9x256xf32, #tpu.memory_space<vmem>>, vector<9x256xf32>
    %5 = arith.addf %1, %3 : vector<4x256xf32>
    %6 = arith.mulf %1, %3 : vector<4x256xf32>
    %7 = arith.maximumf %1, %3 : vector<4x256xf32>
    %8 = tpu.concatenate %5, %6, %7 in 0 : vector<4x256xf32>, vector<4x256xf32>, vector<4x256xf32> -> vector<12x256xf32>
    %c17_i32 = arith.constant 17 : i32
    %9 = tpu.dynamic_rotate %8 by %c17_i32 dim 1 : vector<12x256xf32>, i32 -> vector<12x256xf32>
    %10 = vector.extract_strided_slice %4 {offsets = [0, 0], sizes = [1, 256], strides = [1, 1]} : vector<9x256xf32> to vector<1x256xf32>
    %11 = vector.broadcast %10 : vector<1x256xf32> to vector<12x256xf32>
    %12 = arith.mulf %9, %11 : vector<12x256xf32>
    %c16_i32 = arith.constant 16 : i32
    %13 = tpu.dynamic_rotate %8 by %c16_i32 dim 1 : vector<12x256xf32>, i32 -> vector<12x256xf32>
    %14 = vector.extract_strided_slice %4 {offsets = [1, 0], sizes = [1, 256], strides = [1, 1]} : vector<9x256xf32> to vector<1x256xf32>
    %15 = vector.broadcast %14 : vector<1x256xf32> to vector<12x256xf32>
    %16 = arith.mulf %13, %15 : vector<12x256xf32>
    %c15_i32 = arith.constant 15 : i32
    %17 = tpu.dynamic_rotate %8 by %c15_i32 dim 1 : vector<12x256xf32>, i32 -> vector<12x256xf32>
    %18 = vector.extract_strided_slice %4 {offsets = [2, 0], sizes = [1, 256], strides = [1, 1]} : vector<9x256xf32> to vector<1x256xf32>
    %19 = vector.broadcast %18 : vector<1x256xf32> to vector<12x256xf32>
    %20 = arith.mulf %17, %19 : vector<12x256xf32>
    %c1_i32 = arith.constant 1 : i32
    %21 = tpu.dynamic_rotate %8 by %c1_i32 dim 1 : vector<12x256xf32>, i32 -> vector<12x256xf32>
    %22 = vector.extract_strided_slice %4 {offsets = [3, 0], sizes = [1, 256], strides = [1, 1]} : vector<9x256xf32> to vector<1x256xf32>
    %23 = vector.broadcast %22 : vector<1x256xf32> to vector<12x256xf32>
    %24 = arith.mulf %21, %23 : vector<12x256xf32>
    %c255_i32 = arith.constant 255 : i32
    %25 = tpu.dynamic_rotate %8 by %c255_i32 dim 1 : vector<12x256xf32>, i32 -> vector<12x256xf32>
    %26 = vector.extract_strided_slice %4 {offsets = [5, 0], sizes = [1, 256], strides = [1, 1]} : vector<9x256xf32> to vector<1x256xf32>
    %27 = vector.broadcast %26 : vector<1x256xf32> to vector<12x256xf32>
    %28 = arith.mulf %25, %27 : vector<12x256xf32>
    %c241_i32 = arith.constant 241 : i32
    %29 = tpu.dynamic_rotate %8 by %c241_i32 dim 1 : vector<12x256xf32>, i32 -> vector<12x256xf32>
    %30 = vector.extract_strided_slice %4 {offsets = [6, 0], sizes = [1, 256], strides = [1, 1]} : vector<9x256xf32> to vector<1x256xf32>
    %31 = vector.broadcast %30 : vector<1x256xf32> to vector<12x256xf32>
    %32 = arith.mulf %29, %31 : vector<12x256xf32>
    %c240_i32 = arith.constant 240 : i32
    %33 = tpu.dynamic_rotate %8 by %c240_i32 dim 1 : vector<12x256xf32>, i32 -> vector<12x256xf32>
    %34 = vector.extract_strided_slice %4 {offsets = [7, 0], sizes = [1, 256], strides = [1, 1]} : vector<9x256xf32> to vector<1x256xf32>
    %35 = vector.broadcast %34 : vector<1x256xf32> to vector<12x256xf32>
    %36 = arith.mulf %33, %35 : vector<12x256xf32>
    %c239_i32 = arith.constant 239 : i32
    %37 = tpu.dynamic_rotate %8 by %c239_i32 dim 1 : vector<12x256xf32>, i32 -> vector<12x256xf32>
    %38 = vector.extract_strided_slice %4 {offsets = [8, 0], sizes = [1, 256], strides = [1, 1]} : vector<9x256xf32> to vector<1x256xf32>
    %39 = vector.broadcast %38 : vector<1x256xf32> to vector<12x256xf32>
    %40 = arith.mulf %37, %39 : vector<12x256xf32>
    %41 = tpu.concatenate %12, %16, %20, %24, %8, %28, %32, %36, %40 in 0 : vector<12x256xf32>, vector<12x256xf32>, vector<12x256xf32>, vector<12x256xf32>, vector<12x256xf32>, vector<12x256xf32>, vector<12x256xf32>, vector<12x256xf32>, vector<12x256xf32> -> vector<108x256xf32>
    %c0_7 = arith.constant 0 : index
    %c0_8 = arith.constant 0 : index
    %42 = vector.load %arg4[%c0_7, %c0_8] : memref<4x108xf32, #tpu.memory_space<vmem>>, vector<4x108xf32>
    %cst = arith.constant dense<0.000000e+00> : vector<4x256xf32>
    %43 = tpu.matmul %42, %41, %cst {dimension_numbers = #tpu.dot_dimension_numbers<[1], [0], [0], [1], [0, 0, 1, 1], [], []>} : vector<4x108xf32>, vector<108x256xf32>, vector<4x256xf32> -> vector<4x256xf32>
    %c0_9 = arith.constant 0 : index
    %c0_10 = arith.constant 0 : index
    %44 = vector.load %arg5[%c0_9, %c0_10] : memref<4x1xf32, #tpu.memory_space<vmem>>, vector<4x1xf32>
    %45 = vector.broadcast %44 : vector<4x1xf32> to vector<4x256xf32>
    %46 = arith.addf %43, %45 : vector<4x256xf32>
    %cst_11 = arith.constant 0.000000e+00 : f32
    %47 = vector.broadcast %cst_11 : f32 to vector<4x256xf32>
    %48 = arith.cmpf oge, %46, %47 : vector<4x256xf32>
    %cst_12 = arith.constant 2.000000e-01 : f32
    %49 = vector.broadcast %cst_12 : f32 to vector<4x256xf32>
    %50 = arith.mulf %49, %46 : vector<4x256xf32>
    %51 = arith.select %48, %46, %50 : vector<4x256xi1>, vector<4x256xf32>
    %c17_i32_13 = arith.constant 17 : i32
    %52 = tpu.dynamic_rotate %51 by %c17_i32_13 dim 1 : vector<4x256xf32>, i32 -> vector<4x256xf32>
    %53 = vector.extract_strided_slice %4 {offsets = [0, 0], sizes = [1, 256], strides = [1, 1]} : vector<9x256xf32> to vector<1x256xf32>
    %54 = vector.broadcast %53 : vector<1x256xf32> to vector<4x256xf32>
    %55 = arith.mulf %52, %54 : vector<4x256xf32>
    %c16_i32_14 = arith.constant 16 : i32
    %56 = tpu.dynamic_rotate %51 by %c16_i32_14 dim 1 : vector<4x256xf32>, i32 -> vector<4x256xf32>
    %57 = vector.extract_strided_slice %4 {offsets = [1, 0], sizes = [1, 256], strides = [1, 1]} : vector<9x256xf32> to vector<1x256xf32>
    %58 = vector.broadcast %57 : vector<1x256xf32> to vector<4x256xf32>
    %59 = arith.mulf %56, %58 : vector<4x256xf32>
    %c15_i32_15 = arith.constant 15 : i32
    %60 = tpu.dynamic_rotate %51 by %c15_i32_15 dim 1 : vector<4x256xf32>, i32 -> vector<4x256xf32>
    %61 = vector.extract_strided_slice %4 {offsets = [2, 0], sizes = [1, 256], strides = [1, 1]} : vector<9x256xf32> to vector<1x256xf32>
    %62 = vector.broadcast %61 : vector<1x256xf32> to vector<4x256xf32>
    %63 = arith.mulf %60, %62 : vector<4x256xf32>
    %c1_i32_16 = arith.constant 1 : i32
    %64 = tpu.dynamic_rotate %51 by %c1_i32_16 dim 1 : vector<4x256xf32>, i32 -> vector<4x256xf32>
    %65 = vector.extract_strided_slice %4 {offsets = [3, 0], sizes = [1, 256], strides = [1, 1]} : vector<9x256xf32> to vector<1x256xf32>
    %66 = vector.broadcast %65 : vector<1x256xf32> to vector<4x256xf32>
    %67 = arith.mulf %64, %66 : vector<4x256xf32>
    %c255_i32_17 = arith.constant 255 : i32
    %68 = tpu.dynamic_rotate %51 by %c255_i32_17 dim 1 : vector<4x256xf32>, i32 -> vector<4x256xf32>
    %69 = vector.extract_strided_slice %4 {offsets = [5, 0], sizes = [1, 256], strides = [1, 1]} : vector<9x256xf32> to vector<1x256xf32>
    %70 = vector.broadcast %69 : vector<1x256xf32> to vector<4x256xf32>
    %71 = arith.mulf %68, %70 : vector<4x256xf32>
    %c241_i32_18 = arith.constant 241 : i32
    %72 = tpu.dynamic_rotate %51 by %c241_i32_18 dim 1 : vector<4x256xf32>, i32 -> vector<4x256xf32>
    %73 = vector.extract_strided_slice %4 {offsets = [6, 0], sizes = [1, 256], strides = [1, 1]} : vector<9x256xf32> to vector<1x256xf32>
    %74 = vector.broadcast %73 : vector<1x256xf32> to vector<4x256xf32>
    %75 = arith.mulf %72, %74 : vector<4x256xf32>
    %c240_i32_19 = arith.constant 240 : i32
    %76 = tpu.dynamic_rotate %51 by %c240_i32_19 dim 1 : vector<4x256xf32>, i32 -> vector<4x256xf32>
    %77 = vector.extract_strided_slice %4 {offsets = [7, 0], sizes = [1, 256], strides = [1, 1]} : vector<9x256xf32> to vector<1x256xf32>
    %78 = vector.broadcast %77 : vector<1x256xf32> to vector<4x256xf32>
    %79 = arith.mulf %76, %78 : vector<4x256xf32>
    %c239_i32_20 = arith.constant 239 : i32
    %80 = tpu.dynamic_rotate %51 by %c239_i32_20 dim 1 : vector<4x256xf32>, i32 -> vector<4x256xf32>
    %81 = vector.extract_strided_slice %4 {offsets = [8, 0], sizes = [1, 256], strides = [1, 1]} : vector<9x256xf32> to vector<1x256xf32>
    %82 = vector.broadcast %81 : vector<1x256xf32> to vector<4x256xf32>
    %83 = arith.mulf %80, %82 : vector<4x256xf32>
    %84 = tpu.concatenate %55, %59, %63, %67, %51, %71, %75, %79, %83 in 0 : vector<4x256xf32>, vector<4x256xf32>, vector<4x256xf32>, vector<4x256xf32>, vector<4x256xf32>, vector<4x256xf32>, vector<4x256xf32>, vector<4x256xf32>, vector<4x256xf32> -> vector<36x256xf32>
    %c0_21 = arith.constant 0 : index
    %c0_22 = arith.constant 0 : index
    %85 = vector.load %arg6[%c0_21, %c0_22] : memref<8x36xf32, #tpu.memory_space<vmem>>, vector<8x36xf32>
    %cst_23 = arith.constant dense<0.000000e+00> : vector<8x256xf32>
    %86 = tpu.matmul %85, %84, %cst_23 {dimension_numbers = #tpu.dot_dimension_numbers<[1], [0], [0], [1], [0, 0, 1, 1], [], []>} : vector<8x36xf32>, vector<36x256xf32>, vector<8x256xf32> -> vector<8x256xf32>
    %c0_24 = arith.constant 0 : index
    %c0_25 = arith.constant 0 : index
    %87 = vector.load %arg7[%c0_24, %c0_25] : memref<8x1xf32, #tpu.memory_space<vmem>>, vector<8x1xf32>
    %88 = vector.broadcast %87 : vector<8x1xf32> to vector<8x256xf32>
    %89 = arith.addf %86, %88 : vector<8x256xf32>
    %cst_26 = arith.constant 0.000000e+00 : f32
    %90 = vector.broadcast %cst_26 : f32 to vector<8x256xf32>
    %91 = arith.cmpf oge, %89, %90 : vector<8x256xf32>
    %cst_27 = arith.constant 2.000000e-01 : f32
    %92 = vector.broadcast %cst_27 : f32 to vector<8x256xf32>
    %93 = arith.mulf %92, %89 : vector<8x256xf32>
    %94 = arith.select %91, %89, %93 : vector<8x256xi1>, vector<8x256xf32>
    %c0_28 = arith.constant 0 : index
    %c0_29 = arith.constant 0 : index
    %c0_30 = arith.constant 0 : index
    %95 = vector.load %arg8[%c0_28, %c0_29, %c0_30] : memref<1x8x256xf32, #tpu.memory_space<vmem>>, vector<1x8x256xf32>
    %96 = vector.shape_cast %95 : vector<1x8x256xf32> to vector<8x256xf32>
    %97 = vector.shape_cast %94 : vector<8x256xf32> to vector<1x8x256xf32>
    tpu.vector_store %arg8[%c0_28, %c0_29, %c0_30], %97 {strides = array<i32>} : memref<1x8x256xf32, #tpu.memory_space<vmem>>, vector<1x8x256xf32>,
    return
  }
  func.func @transform_0(%arg0: i32) -> (i32, i32, i32) {
    %c0_i32 = arith.constant 0 : i32
    %c0_i32_0 = arith.constant 0 : i32
    %c0_i32_1 = arith.constant 0 : i32
    return %arg0, %c0_i32, %c0_i32_0 : i32, i32, i32
  }
  func.func @transform_1(%arg0: i32) -> (i32, i32, i32) {
    %c0_i32 = arith.constant 0 : i32
    %c0_i32_0 = arith.constant 0 : i32
    %c0_i32_1 = arith.constant 0 : i32
    return %arg0, %c0_i32, %c0_i32_0 : i32, i32, i32
  }
  func.func @transform_2(%arg0: i32) -> (i32, i32) {
    %c0_i32 = arith.constant 0 : i32
    %c0_i32_0 = arith.constant 0 : i32
    %c0_i32_1 = arith.constant 0 : i32
    return %c0_i32, %c0_i32_0 : i32, i32
  }
  func.func @transform_3(%arg0: i32) -> (i32, i32) {
    %c0_i32 = arith.constant 0 : i32
    %c0_i32_0 = arith.constant 0 : i32
    %c0_i32_1 = arith.constant 0 : i32
    return %c0_i32, %c0_i32_0 : i32, i32
  }
  func.func @transform_4(%arg0: i32) -> (i32, i32) {
    %c0_i32 = arith.constant 0 : i32
    %c0_i32_0 = arith.constant 0 : i32
    %c0_i32_1 = arith.constant 0 : i32
    return %c0_i32, %c0_i32_0 : i32, i32
  }
  func.func @transform_5(%arg0: i32) -> (i32, i32) {
    %c0_i32 = arith.constant 0 : i32
    %c0_i32_0 = arith.constant 0 : i32
    %c0_i32_1 = arith.constant 0 : i32
    return %c0_i32, %c0_i32_0 : i32, i32
  }
  func.func @transform_6(%arg0: i32) -> (i32, i32) {
    %c0_i32 = arith.constant 0 : i32
    %c0_i32_0 = arith.constant 0 : i32
    %c0_i32_1 = arith.constant 0 : i32
    return %c0_i32, %c0_i32_0 : i32, i32
  }
  func.func @transform_7(%arg0: i32) -> (i32, i32, i32) {
    %c0_i32 = arith.constant 0 : i32
    %c0_i32_0 = arith.constant 0 : i32
    %c0_i32_1 = arith.constant 0 : i32
    return %arg0, %c0_i32, %c0_i32_0 : i32, i32, i32
  }
}

</mosaic_0001>

<bundles_post_ra>
// kernel: _lambda_.1
= control target key start
LH: loop header
LB: loop body
LE: loop exit
PB: predicated region body
PF: predicated region fallthrough
CT: control target
= control target key end

     0   :  { %s1080_s24 = smov 0   ;;  %s1486_s0 = inlined_call_operand.vmem [shape: f32[2,4,256], index: 0, kind: input, shape index: {}]   ;;  %s1487_s1 = inlined_call_operand.vmem [shape: f32[2,4,256], index: 1, kind: input, shape index: {}]   ;;  %s1488_s2 = inlined_call_operand.vmem [shape: f32[9,256], index: 2, kind: input, shape index: {}]   ;;  %s1489_s3 = inlined_call_operand.vmem [shape: f32[4,108], index: 3, kind: input, shape index: {}]   ;;  %s1490_s4 = inlined_call_operand.vmem [shape: f32[4,1], index: 4, kind: input, shape index: {}]   ;;  %s1491_s5 = inlined_call_operand.vmem [shape: f32[8,36], index: 5, kind: input, shape index: {}]   ;;  %s1492_s6 = inlined_call_operand.vmem [shape: f32[8,1], index: 6, kind: input, shape index: {}]   ;;  %s1493_s7 = inlined_call_operand.vmem [shape: f32[2,8,256], index: 7, kind: output, shape index: {}]  }
   0x1 LB: > { %s939_s25 = sadd.s32 4294967295, %s1027_s24   ;;  %p943_p0 = scmp.ge.s32.totalorder %s1027_s24, 1  ;;  %s1027_s24 = sphi %s1080_s24, %s17_s24  }
   0x2   : > { %p247_p1 = scmp.lt.s32.totalorder %s1027_s24, 3 }
   0x4   : > { %p248_p2 = pnand %p943_p0, %p247_p1 }
   0x5   : > { %p284_p3 = scmp.lt.s32.totalorder (!%p248_p2), %s939_s25, 1  ;;  %vm317_vm0 = vcmask (!%p248_p2), 1043456   ;;  %s1029_s10 = smov (!%p248_p2), 16   ;;  %v1036_v10 = vmov (!%p248_p2), 0.0   ;;  %v1038_v11 = vmov (!%p248_p2), 0   ;;  %v328_v13 = vlaneseq (!%p248_p2)  ;;  %v1185_v20 = vld [vmem:[%s1488_s2] sm:$0xff] (!%p248_p2) }
   0x6   : > { %251 = sbr.rel (%p248_p2) target bundleno = 795 (0x31b), region = 48  ;;  %s1030_s11 = smov (!%p248_p2), 17   ;;  %667 = vmatprep.mubr.f32.mxu0 (!%p248_p2), %v1036_v10  ;;  %857 = vmatprep.mubr.f32.mxu1 (!%p248_p2), %v1036_v10  ;;  %v587_v12 = vld [vmem:[%s1490_s4] sm:$0xf] (!%p248_p2)  ;;  %v1190_v23 = vld [vmem:[%s1488_s2 + $0x8] sm:$0xff] (!%p248_p2)  ;;  %vm1039_vm9 = vmmov (!%p248_p2), 1  }
   0x7   : > { %s1031_s12 = smov (!%p248_p2), 15   ;;  %s1032_s13 = smov (!%p248_p2), 1   ;;  %1020 = vset.pattern.permute.xlu0 (!%p248_p2), %v1038_v11  ;;  %v1176_v14 = vshrl.u32 (!%p248_p2), %v328_v13, 7  ;;  %v1178_v17 = vand.u32 (!%p248_p2), 127, %v328_v13  ;;  %vm988_vm10 = vmpackc.low (!%p248_p2), %vm317_vm0, %vm1039_vm9  ;;  %vm593_vm11 = vcmask (!%p248_p2), 883712   ;;  %vm783_vm14 = vcmask (!%p248_p2), 293888  }
   0x8   : > { %s1033_s14 = smov (!%p248_p2), 127   ;;  %s1034_s15 = smov (!%p248_p2), 113  }
   0x9   : > { %s1035_s16 = smov (!%p248_p2), 112   ;;  %s1037_s17 = smov (!%p248_p2), 111   ;;  %v362_v18 = vsub.s32 (!%p248_p2), 1, %v1176_v14  ;;  %v337_v19 = vsub.s32 (!%p248_p2), 0, %v1176_v14  ;;  %vm330_vm1 = vcmp.lt.s32.totalorder (!%p248_p2), %v1178_v17, 17  ;;  %vm355_vm2 = vcmp.lt.s32.totalorder (!%p248_p2), %v1178_v17, 16 }
   0xa   : > { %v387_v32 = vsub.s32 (!%p248_p2), 2, %v1176_v14  ;;  %vm380_vm3 = vcmp.lt.s32.totalorder (!%p248_p2), %v1178_v17, 15  ;;  %vm405_vm4 = vcmp.lt.s32.totalorder (!%p248_p2), %v1178_v17, 1  ;;  %vm430_vm5 = vcmp.lt.s32.totalorder (!%p248_p2), %v1178_v17, 127 }
   0xb   : > { %v1195_v24 = vrot.slane (!%p248_p2), %v1185_v20, %v362_v18  ;;  %v1198_v25 = vrot.slane (!%p248_p2), %v1190_v23, %v362_v18  ;;  %v1201_v26 = vrot.slane (!%p248_p2), %v1185_v20, %v337_v19  ;;  %v1204_v27 = vrot.slane (!%p248_p2), %v1190_v23, %v337_v19 }
   0xc   : > { %v1231_v49 = vrot.slane (!%p248_p2), %v1185_v20, %v387_v32  ;;  %v1234_v50 = vrot.slane (!%p248_p2), %v1190_v23, %v387_v32  ;;  %v437_v18 = vsub.s32 (!%p248_p2), 5, %v1176_v14  ;;  %vm455_vm6 = vcmp.lt.s32.totalorder (!%p248_p2), %v1178_v17, 113 }
   0xd   : > { %s1495_s25 = smov (!%p284_p3, %s939_s25), 1  ;;  %vm480_vm7 = vcmp.lt.s32.totalorder %v1178_v17, 112  ;;  %vm505_vm8 = vcmp.lt.s32.totalorder %v1178_v17, 111 }
   0xe   : > { %s960_s26 = sshll.u32 %s1495_s25, 3 }
   0xf   : > { %s288_s29 = scalar_lea.vmem %s1486_s0, %s960_s26  ;;  %s293_s9 = scalar_lea.vmem %s1487_s1, %s960_s26 }
  0x10   : > { %v299_v0 = vld [vmem:[%s288_s29] sm:$0xff] }
  0x11   : > { %v300_v1 = vld [vmem:[%s293_s9] sm:$0xff] }
  0x12   : > { %v1097_v2 = vmax.f32 %v299_v0, %v300_v1  ;;  %v305_v3 = vadd.f32 %v300_v1, %v299_v0  ;;  %v306_v4 = vmul.f32 %v300_v1, %v299_v0  ;;  %v412_v1 = vsub.s32 3, %v1176_v14 }
  0x14   : > { %349 = vrot.lane.b32.xlu0 %v1097_v2, %s1029_s10  ;;  %322 = vrot.lane.b32.xlu1 %v1097_v2, %s1030_s11  ;;  %v1105_v5 = vcombine.high %v1097_v2, %v1097_v2  ;;  %v312_v6 = vcombine.low %v306_v4, %v306_v4  ;;  %v309_v7 = vcombine.high %v305_v3, %v305_v3 }
  0x15   : > { %v1254_v13 = vrot.slane %v1190_v23, %v412_v1 }
  0x16   : > { %v1108_v8 = vsel %vm317_vm0, %v305_v3, %v312_v6  ;;  %v1115_v9 = vsel %vm317_vm0, %v309_v7, %v306_v4 }
  0x18   : > { %326 = vrot.lane.b32.xlu1 %v1105_v5, %s1030_s11  ;;  %347 = vrot.lane.b32.xlu0 %v1108_v8, %s1029_s10 }
  0x1c   : > { %353 = vrot.lane.b32.xlu1 %v1105_v5, %s1029_s10  ;;  %351 = vrot.lane.b32.xlu0 %v1115_v9, %s1029_s10 }
  0x20   : > { %324 = vrot.lane.b32.xlu1 %v1115_v9, %s1030_s11  ;;  %320 = vrot.lane.b32.xlu0 %v1108_v8, %s1030_s11 }
  0x24   : > { %376 = vrot.lane.b32.xlu1 %v1115_v9, %s1031_s12  ;;  %372 = vrot.lane.b32.xlu0 %v1108_v8, %s1031_s12 }
  0x28   : > { %399 = vrot.lane.b32.xlu1 %v1097_v2, %s1032_s13  ;;  %397 = vrot.lane.b32.xlu0 %v1108_v8, %s1032_s13 }
  0x2c   : > { %403 = vrot.lane.b32.xlu1 %v1105_v5, %s1032_s13  ;;  %401 = vrot.lane.b32.xlu0 %v1115_v9, %s1032_s13 }
  0x30   : > { %378 = vrot.lane.b32.xlu1 %v1105_v5, %s1031_s12  ;;  %374 = vrot.lane.b32.xlu0 %v1097_v2, %s1031_s12 }
  0x34   : > { %426 = vrot.lane.b32.xlu1 %v1115_v9, %s1033_s14  ;;  %422 = vrot.lane.b32.xlu0 %v1108_v8, %s1033_s14 }
  0x38   : > { %428 = vrot.lane.b32.xlu1 %v1105_v5, %s1033_s14  ;;  %424 = vrot.lane.b32.xlu0 %v1097_v2, %s1033_s14 }
  0x3c   : > { %451 = vrot.lane.b32.xlu1 %v1115_v9, %s1034_s15  ;;  %447 = vrot.lane.b32.xlu0 %v1108_v8, %s1034_s15 }
  0x40   : > { %474 = vrot.lane.b32.xlu1 %v1097_v2, %s1035_s16  ;;  %472 = vrot.lane.b32.xlu0 %v1108_v8, %s1035_s16 }
  0x44   : > { %478 = vrot.lane.b32.xlu1 %v1105_v5, %s1035_s16  ;;  %476 = vrot.lane.b32.xlu0 %v1115_v9, %s1035_s16 }
  0x48   : > { %453 = vrot.lane.b32.xlu1 %v1105_v5, %s1034_s15  ;;  %449 = vrot.lane.b32.xlu0 %v1097_v2, %s1034_s15 }
  0x4c   : > { %499 = vrot.lane.b32.xlu1 %v1097_v2, %s1037_s17  ;;  %497 = vrot.lane.b32.xlu0 %v1108_v8, %s1037_s17 }
  0x50   : > { %503 = vrot.lane.b32.xlu1 %v1105_v5, %s1037_s17  ;;  %501 = vrot.lane.b32.xlu0 %v1115_v9, %s1037_s17 }
  0x54   : > { %590 = vperm.xlu0 %1020, %v587_v12   ;;  %v1251_v12 = vrot.slane %v1185_v20, %v412_v1 }
  0x86   : > { %v350_v15 = vpop.permute.xlu0 %349  ;;  %v323_v16 = vpop.permute.xlu1 %322 }
  0x8a   : > { %v327_v21 = vpop.permute.xlu1 %326  ;;  %v348_v22 = vpop.permute.xlu0 %347 }
  0x8b   : > { %v332_v28 = vsel %vm330_vm1, %v323_v16, %v327_v21  ;;  %v334_v29 = vsel %vm330_vm1, %v327_v21, %v323_v16 }
  0x8c   : > { %v345_v41 = vmul.f32 %v1201_v26, %v334_v29  ;;  %v346_v42 = vmul.f32 %v1204_v27, %v332_v28 }
  0x8e   : > { %v354_v30 = vpop.permute.xlu1 %353  ;;  %v352_v31 = vpop.permute.xlu0 %351 }
  0x8f   : > { %v357_v33 = vsel %vm355_vm2, %v350_v15, %v354_v30  ;;  %v359_v34 = vsel %vm355_vm2, %v354_v30, %v350_v15  ;;  %v356_v35 = vsel %vm355_vm2, %v348_v22, %v352_v31  ;;  %v358_v36 = vsel %vm355_vm2, %v352_v31, %v348_v22 }
  0x90   : > { %v368_v37 = vmul.f32 %v1195_v24, %v358_v36  ;;  %v369_v38 = vmul.f32 %v1198_v25, %v356_v35  ;;  %v370_v39 = vmul.f32 %v1195_v24, %v359_v34  ;;  %v371_v40 = vmul.f32 %v1198_v25, %v357_v33 }
  0x92   : > { %v526_v43 = vrot.slane %v368_v37, 4  ;;  %v527_v44 = vrot.slane %v369_v38, 4  ;;  %v325_v45 = vpop.permute.xlu1 %324  ;;  %v321_v46 = vpop.permute.xlu0 %320  ;;  %v528_v55 = vrot.slane %v370_v39, 4  ;;  %v530_v56 = vrot.slane %v371_v40, 4 }
  0x93   : > { %v331_v47 = vsel %vm330_vm1, %v321_v46, %v325_v45  ;;  %v333_v48 = vsel %vm330_vm1, %v325_v45, %v321_v46  ;;  %v462_v45 = vsub.s32 6, %v1176_v14 }
  0x94   : > { %v343_v51 = vmul.f32 %v1201_v26, %v333_v48  ;;  %v344_v52 = vmul.f32 %v1204_v27, %v331_v47  ;;  %v579_v53 = vsel %vm317_vm0, %v346_v42, %v527_v44  ;;  %v578_v54 = vsel %vm317_vm0, %v345_v41, %v526_v43 }
  0x95   : > { %v531_v3 = vsel %vm317_vm0, %v527_v44, %v530_v56  ;;  %v529_v4 = vsel %vm317_vm0, %v526_v43, %v528_v55  ;;  %v1277_v43 = vrot.slane %v1185_v20, %v437_v18  ;;  %v1280_v44 = vrot.slane %v1190_v23, %v437_v18 }
  0x96   : > { %v377_v57 = vpop.permute.xlu1 %376  ;;  %v373_v58 = vpop.permute.xlu0 %372  ;;  %v963_v59 = vpack.c.bf16 %v579_v53, %v344_v52  ;;  %v965_v60 = vpack.c.bf16 %v578_v54, %v343_v51 }
  0x97   : > { %v381_v61 = vsel %vm380_vm3, %v373_v58, %v377_v57  ;;  %v383_v62 = vsel %vm380_vm3, %v377_v57, %v373_v58 }
  0x98   : > { %v393_v63 = vmul.f32 %v1231_v49, %v383_v62  ;;  %v394_v0 = vmul.f32 %v1234_v50, %v381_v61  ;;  %964 = vmatprep.subr.bf16.mxu0 %v963_v59 }
  0x99   : > { %966 = vmatpush1.bf16.msra.mxu0 %v965_v60 }
  0x9a   : > { %v400_v6 = vpop.permute.xlu1 %399  ;;  %v398_v7 = vpop.permute.xlu0 %397  ;;  %v967_v10 = vpack.c.bf16 %v394_v0, %v531_v3  ;;  %v969_v11 = vpack.c.bf16 %v393_v63, %v529_v4  ;;  %v1299_v3 = vrot.slane %v1185_v20, %v462_v45  ;;  %v1302_v4 = vrot.slane %v1190_v23, %v462_v45 }
  0x9c   : > { %968 = vmatprep.subr.bf16.mxu0 %v967_v10 }
  0x9d   : > { %970 = vmatpush1.bf16.msra.mxu0 %v969_v11 }
  0x9e   : > { %v404_v15 = vpop.permute.xlu1 %403  ;;  %v402_v16 = vpop.permute.xlu0 %401 }
  0x9f   : > { %v407_v19 = vsel %vm405_vm4, %v400_v6, %v404_v15  ;;  %v409_v21 = vsel %vm405_vm4, %v404_v15, %v400_v6  ;;  %v406_v22 = vsel %vm405_vm4, %v398_v7, %v402_v16  ;;  %v408_v28 = vsel %vm405_vm4, %v402_v16, %v398_v7 }
  0xa0   : > { %v420_v29 = vmul.f32 %v1251_v12, %v409_v21  ;;  %v421_v30 = vmul.f32 %v1254_v13, %v407_v19  ;;  %v418_v31 = vmul.f32 %v1251_v12, %v408_v28  ;;  %v419_v32 = vmul.f32 %v1254_v13, %v406_v22 }
  0xa2   : > { %v542_v33 = vrot.slane %v420_v29, 4  ;;  %v544_v34 = vrot.slane %v421_v30, 4  ;;  %v540_v35 = vrot.slane %v418_v31, 4  ;;  %v541_v36 = vrot.slane %v419_v32, 4  ;;  %v379_v37 = vpop.permute.xlu1 %378  ;;  %v375_v38 = vpop.permute.xlu0 %374 }
  0xa3   : > { %v382_v39 = vsel %vm380_vm3, %v375_v38, %v379_v37  ;;  %v384_v40 = vsel %vm380_vm3, %v379_v37, %v375_v38 }
  0xa4   : > { %v395_v41 = vmul.f32 %v1231_v49, %v384_v40  ;;  %v396_v42 = vmul.f32 %v1234_v50, %v382_v39  ;;  %v545_v48 = vsel %vm317_vm0, %v541_v36, %v544_v34  ;;  %v543_v52 = vsel %vm317_vm0, %v540_v35, %v542_v33 }
  0xa6   : > { %v427_v46 = vpop.permute.xlu1 %426  ;;  %v423_v47 = vpop.permute.xlu0 %422  ;;  %v581_v51 = vsel %vm317_vm0, %v396_v42, %v541_v36  ;;  %v580_v53 = vsel %vm317_vm0, %v395_v41, %v540_v35 }
  0xa7   : > { %v431_v54 = vsel %vm430_vm5, %v423_v47, %v427_v46  ;;  %v433_v55 = vsel %vm430_vm5, %v427_v46, %v423_v47  ;;  %v971_v56 = vpack.c.bf16 %v545_v48, %v581_v51  ;;  %v973_v57 = vpack.c.bf16 %v543_v52, %v580_v53 }
  0xa8   : > { %v443_v58 = vmul.f32 %v1277_v43, %v431_v54  ;;  %v444_v59 = vmul.f32 %v1280_v44, %v433_v55 }
  0xa9   : > { %972 = vmatprep.subr.bf16.mxu0 %v971_v56 }
  0xaa   : > { %v554_v60 = vrot.slane %v443_v58, 4  ;;  %v555_v61 = vrot.slane %v444_v59, 4  ;;  %v429_v62 = vpop.permute.xlu1 %428  ;;  %974 = vmatpush1.bf16.msra.mxu0 %v973_v57  ;;  %v425_v63 = vpop.permute.xlu0 %424 }
  0xab   : > { %v432_v0 = vsel %vm430_vm5, %v425_v63, %v429_v62  ;;  %v434_v1 = vsel %vm430_vm5, %v429_v62, %v425_v63 }
  0xac   : > { %v445_v6 = vmul.f32 %v1277_v43, %v432_v0  ;;  %v446_v7 = vmul.f32 %v1280_v44, %v434_v1  ;;  %v583_v10 = vsel %vm317_vm0, %v1105_v5, %v555_v61  ;;  %v582_v11 = vsel %vm317_vm0, %v1097_v2, %v554_v60 }
  0xad   : > { %v975_v15 = vpack.c.bf16 %v583_v10, %v1115_v9  ;;  %v977_v16 = vpack.c.bf16 %v582_v11, %v1108_v8  ;;  %v487_v5 = vsub.s32 7, %v1176_v14 }
  0xae   : > { %v556_v18 = vrot.slane %v445_v6, 4  ;;  %v558_v19 = vrot.slane %v446_v7, 4  ;;  %v452_v21 = vpop.permute.xlu1 %451  ;;  %v448_v22 = vpop.permute.xlu0 %447  ;;  %v1354_v6 = vld [vmem:[%s1488_s2 + $0x10] ss:$0 sm:$0xff]  ;;  %v1359_v7 = vld [vmem:[%s1488_s2 + $0x18] ss:$0 sm:$0xff] }
  0xaf   : > { %v456_v28 = vsel %vm455_vm6, %v448_v22, %v452_v21  ;;  %v458_v29 = vsel %vm455_vm6, %v452_v21, %v448_v22  ;;  %976 = vmatprep.subr.bf16.mxu0 %v975_v15  ;;  %v1323_v35 = vrot.slane %v1185_v20, %v487_v5  ;;  %v1326_v14 = vrot.slane %v1190_v23, %v487_v5 }
  0xb0   : > { %v468_v30 = vmul.f32 %v1299_v3, %v456_v28  ;;  %v469_v2 = vmul.f32 %v1302_v4, %v458_v29  ;;  %978 = vmatpush1.bf16.msra.mxu0 %v977_v16  ;;  %v559_v8 = vsel %vm317_vm0, %v555_v61, %v558_v19  ;;  %v557_v9 = vsel %vm317_vm0, %v554_v60, %v556_v18 }
  0xb2   : > { %v475_v31 = vpop.permute.xlu1 %474  ;;  %v473_v32 = vpop.permute.xlu0 %472  ;;  %v979_v33 = vpack.c.bf16 %v469_v2, %v559_v8  ;;  %v981_v34 = vpack.c.bf16 %v468_v30, %v557_v9  ;;  %v586_v2 = vld [vmem:[%s1489_s3] sm:$0xf] }
  0xb4   : > { %980 = vmatprep.subr.bf16.mxu0 %v979_v33 }
  0xb5   : > { %982 = vmatpush1.bf16.msra.mxu0 %v981_v34 }
  0xb6   : > { %v479_v36 = vpop.permute.xlu1 %478  ;;  %v477_v37 = vpop.permute.xlu0 %476 }
  0xb7   : > { %v482_v38 = vsel %vm480_vm7, %v475_v31, %v479_v36  ;;  %v484_v39 = vsel %vm480_vm7, %v479_v36, %v475_v31  ;;  %v481_v40 = vsel %vm480_vm7, %v473_v32, %v477_v37  ;;  %v483_v41 = vsel %vm480_vm7, %v477_v37, %v473_v32 }
  0xb8   : > { %v495_v20 = vmul.f32 %v1323_v35, %v482_v38  ;;  %v496_v23 = vmul.f32 %v1326_v14, %v484_v39  ;;  %v493_v42 = vmul.f32 %v1323_v35, %v481_v40  ;;  %v494_v45 = vmul.f32 %v1326_v14, %v483_v41  ;;  %v777_v39 = vld [vmem:[%s1492_s6] sm:$0xff] }
  0xba   : > { %v570_v46 = vrot.slane %v495_v20, 4  ;;  %v572_v47 = vrot.slane %v496_v23, 4  ;;  %v568_v48 = vrot.slane %v493_v42, 4  ;;  %v569_v51 = vrot.slane %v494_v45, 4  ;;  %v454_v52 = vpop.permute.xlu1 %453  ;;  %v450_v53 = vpop.permute.xlu0 %449 }
  0xbb   : > { %v457_v54 = vsel %vm455_vm6, %v450_v53, %v454_v52  ;;  %v459_v55 = vsel %vm455_vm6, %v454_v52, %v450_v53 }
  0xbc   : > { %v470_v56 = vmul.f32 %v1299_v3, %v457_v54  ;;  %v471_v57 = vmul.f32 %v1302_v4, %v459_v55  ;;  %v573_v60 = vsel %vm317_vm0, %v569_v51, %v572_v47  ;;  %v571_v62 = vsel %vm317_vm0, %v568_v48, %v570_v46 }
  0xbe   : > { %v500_v58 = vpop.permute.xlu1 %499  ;;  %v498_v59 = vpop.permute.xlu0 %497  ;;  %v585_v61 = vsel %vm317_vm0, %v471_v57, %v569_v51  ;;  %v584_v63 = vsel %vm317_vm0, %v470_v56, %v568_v48 }
  0xbf   : > { %v983_v0 = vpack.c.bf16 %v573_v60, %v585_v61  ;;  %v985_v1 = vpack.c.bf16 %v571_v62, %v584_v63 }
  0xc1   : > { %984 = vmatprep.subr.bf16.mxu0 %v983_v0 }
  0xc2   : > { %v504_v10 = vpop.permute.xlu1 %503  ;;  %986 = vmatpush1.bf16.msra.mxu0 %v985_v1  ;;  %v502_v11 = vpop.permute.xlu0 %501 }
  0xc3   : > { %v507_v15 = vsel %vm505_vm8, %v500_v58, %v504_v10  ;;  %v509_v16 = vsel %vm505_vm8, %v504_v10, %v500_v58  ;;  %v506_v18 = vsel %vm505_vm8, %v498_v59, %v502_v11  ;;  %v508_v19 = vsel %vm505_vm8, %v502_v11, %v498_v59 }
  0xc4   : > { %v520_v21 = vmul.f32 %v1354_v6, %v507_v15  ;;  %v521_v22 = vmul.f32 %v1359_v7, %v509_v16  ;;  %v518_v28 = vmul.f32 %v1354_v6, %v506_v18  ;;  %v519_v29 = vmul.f32 %v1359_v7, %v508_v19 }
  0xc6   : > { %v987_v5 = vpack.c.bf16 %v521_v22, %v519_v29  ;;  %v990_v30 = vpack.c.bf16 %v520_v21, %v518_v28 }
  0xc8   : > { %989 = vmatprep.subr.msk.bf16.mxu0 %vm988_vm10, %v987_v5 }
  0xc9   : > { %992 = vmatpush1.bf16.msk.msra.mxu0 %vm988_vm10, %v990_v30 }
  0xcc   : > { %954 = vmatmul.mubr.msk.f32.vlgmr.msra.gmra.mrb[0].mxu0 %vm593_vm11, %v586_v2 }
  0xd3   : > { %v591_v8 = vpop.permute.xlu0 %590 }
 0x19f   : > { %v669_v9 = vpop.f32.mrb[0].mxu0 }
 0x1a0   : > { %v670_v31 = vadd.f32 %v669_v9, %v591_v8  ;;  %v671_v32 = vpop.f32.mrb[1].mxu0 }
 0x1a1   : > { %v672_v33 = vadd.f32 %v671_v32, %v591_v8 }
 0x1a2   : > { %vm674_vm12 = vcmp.ge.f32.partialorder %v670_v31, 0.0  ;;  %v676_v34 = vmul.f32 0.2, %v670_v31 }
 0x1a3   : > { %v677_v37 = vmul.f32 0.2, %v672_v33  ;;  %vm675_vm13 = vcmp.ge.f32.partialorder %v672_v33, 0.0 }
 0x1a4   : > { %v1377_v36 = vsel %vm674_vm12, %v670_v31, %v676_v34 }
 0x1a5   : > { %704 = vrot.lane.b32.xlu0 %v1377_v36, %s1032_s13  ;;  %688 = vrot.lane.b32.xlu1 %v1377_v36, %s1029_s10  ;;  %v1383_v38 = vsel %vm675_vm13, %v672_v33, %v677_v37 }
 0x1a9   : > { %680 = vrot.lane.b32.xlu0 %v1377_v36, %s1030_s11  ;;  %690 = vrot.lane.b32.xlu1 %v1383_v38, %s1029_s10 }
 0x1ad   : > { %696 = vrot.lane.b32.xlu0 %v1377_v36, %s1031_s12  ;;  %706 = vrot.lane.b32.xlu1 %v1383_v38, %s1032_s13  ;;  %s962_s13 = sshll.u32 %s1495_s25, 4 }
 0x1b1   : > { %712 = vrot.lane.b32.xlu0 %v1377_v36, %s1033_s14  ;;  %682 = vrot.lane.b32.xlu1 %v1383_v38, %s1030_s11 }
 0x1b5   : > { %728 = vrot.lane.b32.xlu0 %v1377_v36, %s1035_s16  ;;  %698 = vrot.lane.b32.xlu1 %v1383_v38, %s1031_s12 }
 0x1b9   : > { %720 = vrot.lane.b32.xlu0 %v1377_v36, %s1034_s15  ;;  %714 = vrot.lane.b32.xlu1 %v1383_v38, %s1033_s14 }
 0x1bd   : > { %736 = vrot.lane.b32.xlu0 %v1377_v36, %s1037_s17  ;;  %730 = vrot.lane.b32.xlu1 %v1383_v38, %s1035_s16  ;;  %s298_s16 = scalar_lea.vmem %s1493_s7, %s962_s13 }
 0x1c1   : > { %780 = vperm.xlu0 %1020, %v777_v39   ;;  %722 = vrot.lane.b32.xlu1 %v1383_v38, %s1034_s15 }
 0x1c5   : > { %738 = vrot.lane.b32.xlu1 %v1383_v38, %s1037_s17 }
 0x217   : > { %v705_v40 = vpop.permute.xlu0 %704  ;;  %v689_v41 = vpop.permute.xlu1 %688 }
 0x21b   : > { %v681_v20 = vpop.permute.xlu0 %680  ;;  %v691_v23 = vpop.permute.xlu1 %690 }
 0x21c   : > { %v692_v46 = vsel %vm355_vm2, %v689_v41, %v691_v23  ;;  %v693_v47 = vsel %vm355_vm2, %v691_v23, %v689_v41 }
 0x21d   : > { %v694_v53 = vmul.f32 %v693_v47, %v1195_v24  ;;  %v695_v54 = vmul.f32 %v692_v46, %v1198_v25 }
 0x21f   : > { %v697_v42 = vpop.permute.xlu0 %696  ;;  %v707_v45 = vpop.permute.xlu1 %706  ;;  %v746_v63 = vrot.slane %v694_v53, 4  ;;  %v747_v24 = vrot.slane %v695_v54, 4 }
 0x220   : > { %v708_v48 = vsel %vm405_vm4, %v705_v40, %v707_v45  ;;  %v709_v51 = vsel %vm405_vm4, %v707_v45, %v705_v40 }
 0x221   : > { %v710_v57 = vmul.f32 %v709_v51, %v1251_v12  ;;  %v711_v58 = vmul.f32 %v708_v48, %v1254_v13 }
 0x223   : > { %v683_v52 = vpop.permute.xlu1 %682  ;;  %v713_v59 = vpop.permute.xlu0 %712  ;;  %v752_v1 = vrot.slane %v710_v57, 4  ;;  %v753_v10 = vrot.slane %v711_v58, 4 }
 0x224   : > { %v684_v55 = vsel %vm330_vm1, %v681_v20, %v683_v52  ;;  %v685_v56 = vsel %vm330_vm1, %v683_v52, %v681_v20 }
 0x225   : > { %v686_v60 = vmul.f32 %v685_v56, %v1201_v26  ;;  %v687_v61 = vmul.f32 %v684_v55, %v1204_v27 }
 0x227   : > { %v699_v62 = vpop.permute.xlu1 %698  ;;  %v729_v11 = vpop.permute.xlu0 %728  ;;  %v769_v26 = vsel %vm317_vm0, %v687_v61, %v747_v24  ;;  %v768_v16 = vsel %vm317_vm0, %v686_v60, %v746_v63 }
 0x228   : > { %v700_v25 = vsel %vm380_vm3, %v697_v42, %v699_v62  ;;  %v701_v0 = vsel %vm380_vm3, %v699_v62, %v697_v42 }
 0x229   : > { %v702_v12 = vmul.f32 %v701_v0, %v1231_v49  ;;  %v703_v13 = vmul.f32 %v700_v25, %v1234_v50 }
 0x22b   : > { %v715_v15 = vpop.permute.xlu1 %714  ;;  %v771_v27 = vsel %vm317_vm0, %v703_v13, %v753_v10  ;;  %v770_v18 = vsel %vm317_vm0, %v702_v12, %v752_v1  ;;  %v721_v2 = vpop.permute.xlu0 %720 }
 0x22c   : > { %v716_v19 = vsel %vm430_vm5, %v713_v59, %v715_v15  ;;  %v717_v21 = vsel %vm430_vm5, %v715_v15, %v713_v59  ;;  %v993_v22 = vpack.c.bf16 %v771_v27, %v769_v26  ;;  %v995_v49 = vpack.c.bf16 %v770_v18, %v768_v16 }
 0x22d   : > { %v718_v50 = vmul.f32 %v716_v19, %v1277_v43  ;;  %v719_v28 = vmul.f32 %v717_v21, %v1280_v44 }
 0x22e   : > { %994 = vmatprep.subr.bf16.mxu1 %v993_v22 }
 0x22f   : > { %996 = vmatpush1.bf16.msra.mxu1 %v995_v49  ;;  %v731_v29 = vpop.permute.xlu1 %730  ;;  %v758_v31 = vrot.slane %v718_v50, 4  ;;  %v759_v32 = vrot.slane %v719_v28, 4  ;;  %v737_v41 = vpop.permute.xlu0 %736 }
 0x230   : > { %v732_v5 = vsel %vm480_vm7, %v729_v11, %v731_v29  ;;  %v733_v30 = vsel %vm480_vm7, %v731_v29, %v729_v11 }
 0x231   : > { %v734_v8 = vmul.f32 %v732_v5, %v1323_v35  ;;  %v735_v9 = vmul.f32 %v733_v30, %v1326_v14  ;;  %v773_v35 = vsel %vm317_vm0, %v1383_v38, %v759_v32  ;;  %v772_v23 = vsel %vm317_vm0, %v1377_v36, %v758_v31  ;;  %v776_v36 = vld [vmem:[%s1491_s5] sm:$0xff] }
 0x233   : > { %v723_v33 = vpop.permute.xlu1 %722  ;;  %v764_v34 = vrot.slane %v734_v8, 4  ;;  %v765_v37 = vrot.slane %v735_v9, 4 }
 0x234   : > { %v724_v43 = vsel %vm455_vm6, %v721_v2, %v723_v33  ;;  %v725_v44 = vsel %vm455_vm6, %v723_v33, %v721_v2 }
 0x235   : > { %v726_v39 = vmul.f32 %v724_v43, %v1299_v3  ;;  %v727_v40 = vmul.f32 %v725_v44, %v1302_v4 }
 0x237   : > { %v739_v20 = vpop.permute.xlu1 %738  ;;  %v775_v14 = vsel %vm317_vm0, %v727_v40, %v765_v37  ;;  %v774_v42 = vsel %vm317_vm0, %v726_v39, %v764_v34 }
 0x238   : > { %v741_v45 = vsel %vm505_vm8, %v739_v20, %v737_v41  ;;  %v997_v46 = vpack.c.bf16 %v775_v14, %v773_v35  ;;  %v999_v3 = vpack.c.bf16 %v774_v42, %v772_v23  ;;  %v740_v47 = vsel %vm505_vm8, %v737_v41, %v739_v20 }
 0x239   : > { %v743_v4 = vmul.f32 %v1359_v7, %v741_v45  ;;  %v742_v38 = vmul.f32 %v1354_v6, %v740_v47 }
 0x23a   : > { %998 = vmatprep.subr.bf16.mxu1 %v997_v46 }
 0x23b   : > { %1000 = vmatpush1.bf16.msra.mxu1 %v999_v3 }
 0x23c   : > { %955 = vmatprep.subr.msk.mxu1 %vm317_vm0, %v743_v4 }
 0x23f   : > { %956 = vmatpush1.msk.msra.mxu1 %vm317_vm0, %v742_v38 }
 0x240   : > { %957 = vmatmul.mubr.msk.f32.vlgmr.msra.gmra.mrb[0].mxu1 %vm783_vm14, %v776_v36  ;;  %v781_v48 = vpop.permute.xlu0 %780 }
 0x313   : > { %v859_v7 = vpop.f32.mrb[0].mxu1 }
 0x314   : > { %v860_v51 = vadd.f32 %v859_v7, %v781_v48  ;;  %v861_v17 = vpop.f32.mrb[1].mxu1 }
 0x315   : > { %v862_v52 = vadd.f32 %v861_v17, %v781_v48 }
 0x316   : > { %vm864_vm15 = vcmp.ge.f32.partialorder %v860_v51, 0.0  ;;  %v866_v6 = vmul.f32 0.2, %v860_v51 }
 0x317   : > { %vm865_vm1 = vcmp.ge.f32.partialorder %v862_v52, 0.0  ;;  %v867_v53 = vmul.f32 0.2, %v862_v52 }
 0x318   : > { %v868_v54 = vsel %vm864_vm15, %v860_v51, %v866_v6 }
 0x319   : > { %870 = vst [vmem:[%s298_s16] sm:$0xff] %v868_v54  ;;  %v869_v55 = vsel %vm865_vm1, %v862_v52, %v867_v53 }
 0x31a   : > { %871 = vst [vmem:[%s298_s16 + $0x8] sm:$0xff] %v869_v55 }
 0x31b PF: > { %s17_s24 = sadd.s32 1, %s1027_s24  }
 0x31c   : > { %p14_p4 = scmp.ge.s32.totalorder %s17_s24, 4  }
 0x31e   :  { %16 = sbr.rel (!%p14_p4) target bundleno = 1 (0x1), region = 81 }

</bundles_post_ra>
